<compile_context>
chip_gen: v7x
topology: tpu7x:2x2x1
jax: 0.10.0
libtpu: 0.0.40
codegen_flags: <defaults>
</compile_context>

<pallas_src>
import jax
import jax.numpy as jnp
from jax.experimental import pallas as pl
from jax.experimental.pallas import tpu as pltpu


def _round_up(x: int, m: int) -> int:
    return ((x + m - 1) // m) * m


def _policy_kernel(x_ref, w1_ref, b1_ref, w2_ref, b2_ref, w3_ref, b3_ref, o_ref):
    # Shapes (per grid step, batch tile TB on the lane axis):
    #   x:  [S, TB]      w1: [H1, S]   b1: [H1, 1]
    #   h1: [H1, TB]     w2: [H2, H1]  b2: [H2, 1]
    #   h2: [H2, TB]     w3: [A, H2]   b3: [A, 1]
    #   o:  [A, TB]
    # Dots hit the MXU with f32 accumulation; bias adds + tanh run in f32 on
    # the VPU/EUP.  Hidden activations are cast back to the weight dtype
    # (bf16 or f32) before feeding the next matmul.
    x = x_ref[...]
    h1 = jnp.tanh(
        jnp.dot(w1_ref[...], x, preferred_element_type=jnp.float32) + b1_ref[...]
    )
    h2 = jnp.tanh(
        jnp.dot(w2_ref[...], h1.astype(w2_ref.dtype), preferred_element_type=jnp.float32)
        + b2_ref[...]
    )
    out = (
        jnp.dot(w3_ref[...], h2.astype(w3_ref.dtype), preferred_element_type=jnp.float32)
        + b3_ref[...]
    )
    o_ref[...] = jnp.tanh(out)  # outer tanh from StateIndependentPolicy.forward


def state_independent_policy_forward(
    states, params, *, block_b: int = 4096, compute_dtype=jnp.float32
):
    """states: [B, state_dim] float32.  params: dict w1,b1,w2,b2,w3,b3 with
    w_i of shape [in, out] (y = x @ W + b) and b_i of shape [1, out].

    compute_dtype: dtype fed to the MXU for x / W (jnp.bfloat16 recommended on
    v6e/v7x); accumulation, bias adds and tanh always run in float32.
    """
    w1, b1 = params["w1"], params["b1"]
    w2, b2 = params["w2"], params["b2"]
    w3, b3 = params["w3"], params["b3"]

    B, S = states.shape
    H1 = w1.shape[1]
    H2 = w2.shape[1]
    A = w3.shape[1]

    # ---- layout plumbing: batch on the lane axis -------------------------
    # Tile size: multiple of 128 lanes; one tile if B is small, else block_b.
    TB = min(block_b, _round_up(B, 128))
    B_pad = _round_up(B, TB)
    grid_b = B_pad // TB

    x_t = states.T.astype(compute_dtype)                      # [S, B]
    if B_pad != B:
        x_t = jnp.pad(x_t, ((0, 0), (0, B_pad - B)))          # [S, B_pad]

    w1t = w1.T.astype(compute_dtype)                          # [H1, S]
    w2t = w2.T.astype(compute_dtype)                          # [H2, H1]
    w3t = w3.T.astype(compute_dtype)                          # [A, H2]
    b1c = b1.reshape(H1, 1).astype(jnp.float32)               # [H1, 1]
    b2c = b2.reshape(H2, 1).astype(jnp.float32)
    b3c = b3.reshape(A, 1).astype(jnp.float32)

    itemsize = jnp.dtype(compute_dtype).itemsize
    cost = pl.CostEstimate(
        flops=2 * B * (S * H1 + H1 * H2 + H2 * A),
        transcendentals=B * (H1 + H2 + A),
        bytes_accessed=(
            B * S * itemsize                       # states in
            + B * A * 4                            # actions out (f32)
            + (H1 * S + H2 * H1 + A * H2) * itemsize
            + (H1 + H2 + A) * 4                    # biases (f32)
        ),
    )

    out_t = pl.pallas_call(
        _policy_kernel,
        out_shape=jax.ShapeDtypeStruct((A, B_pad), jnp.float32),
        grid=(grid_b,),
        in_specs=[
            pl.BlockSpec((S, TB), lambda i: (0, i)),     # states tile (streamed)
            pl.BlockSpec((H1, S), lambda i: (0, 0)),     # weights/biases resident
            pl.BlockSpec((H1, 1), lambda i: (0, 0)),
            pl.BlockSpec((H2, H1), lambda i: (0, 0)),
            pl.BlockSpec((H2, 1), lambda i: (0, 0)),
            pl.BlockSpec((A, H2), lambda i: (0, 0)),
            pl.BlockSpec((A, 1), lambda i: (0, 0)),
        ],
        out_specs=pl.BlockSpec((A, TB), lambda i: (0, i)),
        compiler_params=pltpu.CompilerParams(
            dimension_semantics=("parallel",),           # megacore shard on v7x
        ),
        cost_estimate=cost,
    )(x_t, w1t, b1c, w2t, b2c, w3t, b3c)

    return out_t[:, :B].T                                # back to [B, A]


def init_params(key, state_dim, action_dim, hidden_units=(64, 64)):
    """Deterministic synthetic parameter init (PyTorch-like uniform fan-in)."""
    dims = (state_dim,) + tuple(hidden_units) + (action_dim,)
    params = {}
    for i, (fan_in, fan_out) in enumerate(zip(dims[:-1], dims[1:]), start=1):
        key, kw, kb = jax.random.split(key, 3)
        bound = 1.0 / jnp.sqrt(jnp.float32(fan_in))
        params[f"w{i}"] = jax.random.uniform(
            kw, (fan_in, fan_out), jnp.float32, -bound, bound
        )
        params[f"b{i}"] = jax.random.uniform(
            kb, (1, fan_out), jnp.float32, -bound, bound
        )
    return params


if __name__ == "__main__":
    key = jax.random.PRNGKey(0)
    k_params, k_states = jax.random.split(key)

    batch = 8
    state_dim = 16      # state_shape = (16,)
    action_dim = 8      # action_shape = (8,)
    hidden_units = (64, 64)

    params = init_params(k_params, state_dim, action_dim, hidden_units)
    states = jax.random.normal(k_states, (batch, state_dim), jnp.float32)

    # f32 path: exact semantics of the PyTorch module.
    actions = state_independent_policy_forward(
        states, params, compute_dtype=jnp.float32
    )
    jax.block_until_ready(actions)

    # bf16-fed MXU path (recommended on v6e/v7x): f32 accumulation + f32 tanh.
    actions_bf16 = state_independent_policy_forward(
        states, params, compute_dtype=jnp.bfloat16
    )
    jax.block_until_ready(actions_bf16)

    # Pure-JAX reference (same math as PyTorch forward).
    h = jnp.tanh(states @ params["w1"] + params["b1"])
    h = jnp.tanh(h @ params["w2"] + params["b2"])
    ref = jnp.tanh(h @ params["w3"] + params["b3"])

    assert actions.shape == (batch, action_dim)
    assert jnp.allclose(actions, ref, atol=1e-5), "Pallas f32 output mismatch"
    assert jnp.allclose(actions_bf16, ref, atol=5e-2), "Pallas bf16 output mismatch"

    print("KERNEL_OK")
</pallas_src>

<mosaic_0001>
module attributes {stable_mosaic.version = 11 : i64} {
  func.func @_policy_kernel(%arg0: i32, %arg1: memref<16x128xf32, #tpu.memory_space<vmem>>, %arg2: memref<64x16xf32, #tpu.memory_space<vmem>>, %arg3: memref<64x1xf32, #tpu.memory_space<vmem>>, %arg4: memref<64x64xf32, #tpu.memory_space<vmem>>, %arg5: memref<64x1xf32, #tpu.memory_space<vmem>>, %arg6: memref<8x64xf32, #tpu.memory_space<vmem>>, %arg7: memref<8x1xf32, #tpu.memory_space<vmem>>, %arg8: memref<8x128xf32, #tpu.memory_space<vmem>>) attributes {dimension_semantics = [#tpu.dimension_semantics<parallel>], iteration_bounds = array<i64: 1>, scalar_prefetch = 0 : i64, scratch_operands = 0 : i64, tpu.core_type = #tpu.core_type<tc>, window_params = [{transform_indices = @transform_0, window_bounds = array<i64: 16, 128>}, {pipeline_mode = #tpu.pipeline_mode<synchronous>, transform_indices = @transform_1, window_bounds = array<i64: 64, 16>}, {pipeline_mode = #tpu.pipeline_mode<synchronous>, transform_indices = @transform_2, window_bounds = array<i64: 64, 1>}, {pipeline_mode = #tpu.pipeline_mode<synchronous>, transform_indices = @transform_3, window_bounds = array<i64: 64, 64>}, {pipeline_mode = #tpu.pipeline_mode<synchronous>, transform_indices = @transform_4, window_bounds = array<i64: 64, 1>}, {pipeline_mode = #tpu.pipeline_mode<synchronous>, transform_indices = @transform_5, window_bounds = array<i64: 8, 64>}, {pipeline_mode = #tpu.pipeline_mode<synchronous>, transform_indices = @transform_6, window_bounds = array<i64: 8, 1>}, {transform_indices = @transform_7, window_bounds = array<i64: 8, 128>}]} {
    %c0 = arith.constant 0 : index
    %c0_0 = arith.constant 0 : index
    %0 = vector.load %arg1[%c0, %c0_0] : memref<16x128xf32, #tpu.memory_space<vmem>>, vector<16x128xf32>
    %c0_1 = arith.constant 0 : index
    %c0_2 = arith.constant 0 : index
    %1 = vector.load %arg2[%c0_1, %c0_2] : memref<64x16xf32, #tpu.memory_space<vmem>>, vector<64x16xf32>
    %cst = arith.constant dense<0.000000e+00> : vector<64x128xf32>
    %2 = tpu.matmul %1, %0, %cst {dimension_numbers = #tpu.dot_dimension_numbers<[1], [0], [0], [1], [0, 0, 1, 1], [], []>} : vector<64x16xf32>, vector<16x128xf32>, vector<64x128xf32> -> vector<64x128xf32>
    %c0_3 = arith.constant 0 : index
    %c0_4 = arith.constant 0 : index
    %3 = vector.load %arg3[%c0_3, %c0_4] : memref<64x1xf32, #tpu.memory_space<vmem>>, vector<64x1xf32>
    %4 = vector.broadcast %3 : vector<64x1xf32> to vector<64x128xf32>
    %5 = arith.addf %2, %4 : vector<64x128xf32>
    %6 = math.tanh %5 : vector<64x128xf32>
    %c0_5 = arith.constant 0 : index
    %c0_6 = arith.constant 0 : index
    %7 = vector.load %arg4[%c0_5, %c0_6] : memref<64x64xf32, #tpu.memory_space<vmem>>, vector<64x64xf32>
    %cst_7 = arith.constant dense<0.000000e+00> : vector<64x128xf32>
    %8 = tpu.matmul %7, %6, %cst_7 {dimension_numbers = #tpu.dot_dimension_numbers<[1], [0], [0], [1], [0, 0, 1, 1], [], []>} : vector<64x64xf32>, vector<64x128xf32>, vector<64x128xf32> -> vector<64x128xf32>
    %c0_8 = arith.constant 0 : index
    %c0_9 = arith.constant 0 : index
    %9 = vector.load %arg5[%c0_8, %c0_9] : memref<64x1xf32, #tpu.memory_space<vmem>>, vector<64x1xf32>
    %10 = vector.broadcast %9 : vector<64x1xf32> to vector<64x128xf32>
    %11 = arith.addf %8, %10 : vector<64x128xf32>
    %12 = math.tanh %11 : vector<64x128xf32>
    %c0_10 = arith.constant 0 : index
    %c0_11 = arith.constant 0 : index
    %13 = vector.load %arg6[%c0_10, %c0_11] : memref<8x64xf32, #tpu.memory_space<vmem>>, vector<8x64xf32>
    %cst_12 = arith.constant dense<0.000000e+00> : vector<8x128xf32>
    %14 = tpu.matmul %13, %12, %cst_12 {dimension_numbers = #tpu.dot_dimension_numbers<[1], [0], [0], [1], [0, 0, 1, 1], [], []>} : vector<8x64xf32>, vector<64x128xf32>, vector<8x128xf32> -> vector<8x128xf32>
    %c0_13 = arith.constant 0 : index
    %c0_14 = arith.constant 0 : index
    %15 = vector.load %arg7[%c0_13, %c0_14] : memref<8x1xf32, #tpu.memory_space<vmem>>, vector<8x1xf32>
    %16 = vector.broadcast %15 : vector<8x1xf32> to vector<8x128xf32>
    %17 = arith.addf %14, %16 : vector<8x128xf32>
    %18 = math.tanh %17 : vector<8x128xf32>
    %c0_15 = arith.constant 0 : index
    %c0_16 = arith.constant 0 : index
    %19 = vector.load %arg8[%c0_15, %c0_16] : memref<8x128xf32, #tpu.memory_space<vmem>>, vector<8x128xf32>
    tpu.vector_store %arg8[%c0_15, %c0_16], %18 {strides = array<i32>} : memref<8x128xf32, #tpu.memory_space<vmem>>, vector<8x128xf32>,
    return
  }
  func.func @transform_0(%arg0: i32) -> (i32, i32) {
    %c0_i32 = arith.constant 0 : i32
    %c0_i32_0 = arith.constant 0 : i32
    return %c0_i32, %arg0 : i32, i32
  }
  func.func @transform_1(%arg0: i32) -> (i32, i32) {
    %c0_i32 = arith.constant 0 : i32
    %c0_i32_0 = arith.constant 0 : i32
    %c0_i32_1 = arith.constant 0 : i32
    return %c0_i32, %c0_i32_0 : i32, i32
  }
  func.func @transform_2(%arg0: i32) -> (i32, i32) {
    %c0_i32 = arith.constant 0 : i32
    %c0_i32_0 = arith.constant 0 : i32
    %c0_i32_1 = arith.constant 0 : i32
    return %c0_i32, %c0_i32_0 : i32, i32
  }
  func.func @transform_3(%arg0: i32) -> (i32, i32) {
    %c0_i32 = arith.constant 0 : i32
    %c0_i32_0 = arith.constant 0 : i32
    %c0_i32_1 = arith.constant 0 : i32
    return %c0_i32, %c0_i32_0 : i32, i32
  }
  func.func @transform_4(%arg0: i32) -> (i32, i32) {
    %c0_i32 = arith.constant 0 : i32
    %c0_i32_0 = arith.constant 0 : i32
    %c0_i32_1 = arith.constant 0 : i32
    return %c0_i32, %c0_i32_0 : i32, i32
  }
  func.func @transform_5(%arg0: i32) -> (i32, i32) {
    %c0_i32 = arith.constant 0 : i32
    %c0_i32_0 = arith.constant 0 : i32
    %c0_i32_1 = arith.constant 0 : i32
    return %c0_i32, %c0_i32_0 : i32, i32
  }
  func.func @transform_6(%arg0: i32) -> (i32, i32) {
    %c0_i32 = arith.constant 0 : i32
    %c0_i32_0 = arith.constant 0 : i32
    %c0_i32_1 = arith.constant 0 : i32
    return %c0_i32, %c0_i32_0 : i32, i32
  }
  func.func @transform_7(%arg0: i32) -> (i32, i32) {
    %c0_i32 = arith.constant 0 : i32
    %c0_i32_0 = arith.constant 0 : i32
    return %c0_i32, %arg0 : i32, i32
  }
}

</mosaic_0001>

<bundles_post_ra>
// kernel: tpu_custom_call.1
= control target key start
LH: loop header
LB: loop body
LE: loop exit
PB: predicated region body
PF: predicated region fallthrough
CT: control target
= control target key end

     0   :  { %vm85_vm0 = vcmask 130048   ;;  %v725_v4 = vmov 0   ;;  %s907_s0 = inlined_call_operand.vmem [shape: f32[16,128], index: 0, kind: input, shape index: {}]   ;;  %s908_s1 = inlined_call_operand.vmem [shape: f32[64,16], index: 1, kind: input, shape index: {}]   ;;  %s909_s2 = inlined_call_operand.vmem [shape: f32[64,1], index: 2, kind: input, shape index: {}]   ;;  %s910_s3 = inlined_call_operand.vmem [shape: f32[64,64], index: 3, kind: input, shape index: {}]   ;;  %s911_s4 = inlined_call_operand.vmem [shape: f32[64,1], index: 4, kind: input, shape index: {}]   ;;  %s912_s5 = inlined_call_operand.vmem [shape: f32[8,64], index: 5, kind: input, shape index: {}]   ;;  %s913_s6 = inlined_call_operand.vmem [shape: f32[8,1], index: 6, kind: input, shape index: {}]   ;;  %s914_s7 = inlined_call_operand.hbm [shape: f32[8,128], index: 7, kind: output, shape index: {}]  }
   0x1   :  { %v27_v0 = vld [vmem:[%s907_s0] sm:$0xff]  ;;  %v28_v1 = vld [vmem:[%s907_s0 + $0x8] sm:$0xff]  ;;  %665 = vset.pattern.permute.xlu0 %v725_v4  ;;  %666 = vset.pattern.permute.xlu1 %v725_v4  ;;  %v39_v7 = vld [vmem:[%s909_s2 + $0x10] sm:$0xff] }
   0x2   :  { %v29_v2 = vld [vmem:[%s908_s1] sm:$0xff]  ;;  %v628_v3 = vpack.c.bf16 %v28_v1, %v27_v0  ;;  %v30_v6 = vld [vmem:[%s908_s1 + $0x8] sm:$0xff]  ;;  %v31_v8 = vld [vmem:[%s908_s1 + $0x10] sm:$0xff]  ;;  %57 = vperm.xlu1 %666, %v39_v7  }
   0x3   :  { %569 = vmatprep.mubr.msk.f32.mxu0 %vm85_vm0, %v29_v2  ;;  %v37_v5 = vld [vmem:[%s909_s2] sm:$0xff]  ;;  %v38_v9 = vld [vmem:[%s909_s2 + $0x8] sm:$0xff]  ;;  %v40_v10 = vld [vmem:[%s909_s2 + $0x18] sm:$0xff] }
   0x4   :  { %629 = vmatprep.subr.bf16.mxu0 %v628_v3  ;;  %47 = vperm.xlu0 %665, %v37_v5   ;;  %v32_v11 = vld [vmem:[%s908_s1 + $0x18] sm:$0xff]  ;;  %v33_v12 = vld [vmem:[%s908_s1 + $0x20] sm:$0xff] }
   0x5   :  { %631 = vmatpush3.bf16.msra.mxu0 %v628_v3  ;;  %v41_v13 = vld [vmem:[%s909_s2 + $0x20] sm:$0xff] }
   0x6   :  { %62 = vperm.xlu1 %666, %v40_v10  }
   0x8   :  { %570 = vmatmul.mubr.msk.f32.vlgmr.msra.gmra.mrb[0].mxu0 %vm85_vm0, %v30_v6  ;;  %52 = vperm.xlu0 %665, %v38_v9  }
   0x9   :  { %572 = vmatprep.mubr.msk.f32.mxu0 %vm85_vm0, %v31_v8 }
   0xa   :  { %12 = vsyncpa [#allocation3], 0  ;;  %v42_v14 = vld [vmem:[%s909_s2 + $0x28] sm:$0xff]  ;;  %v35_v16 = vld [vmem:[%s908_s1 + $0x30] sm:$0xff]  ;;  %vm279_vm1 = vcmask 523264   ;;  %v726_v9 = vmov 0.0|0.0  }
   0xb   :  { %v34_v15 = vld [vmem:[%s908_s1 + $0x28] sm:$0xff]  ;;  %v43_v17 = vld [vmem:[%s909_s2 + $0x30] sm:$0xff]  ;;  %72 = vperm.xlu1 %666, %v42_v14   ;;  %v44_v18 = vld [vmem:[%s909_s2 + $0x38] sm:$0xff]  ;;  %648 = vmatprep.subr.bf16.mxu0 %v726_v9  ;;  %vm727_vm2 = vmmov 0   ;;  %v728_v10 = vmov 0.0  }
   0xc   :  { %573 = vmatmul.mubr.msk.f32.gmra.mrb[2].mxu0 %vm85_vm0, %v32_v11  ;;  %67 = vperm.xlu0 %665, %v41_v13   ;;  %v36_v19 = vld [vmem:[%s908_s1 + $0x38] sm:$0xff]  ;;  %v231_v20 = vld [vmem:[%s911_s4] sm:$0xff]  ;;  %v232_v21 = vld [vmem:[%s911_s4 + $0x8] sm:$0xff]  ;;  %s729_s1 = smov [#allocation2]  }
   0xd   :  { %575 = vmatprep.mubr.msk.f32.mxu0 %vm85_vm0, %v33_v12  ;;  %v233_v22 = vld [vmem:[%s911_s4 + $0x10] sm:$0xff]  ;;  %v234_v23 = vld [vmem:[%s911_s4 + $0x18] sm:$0xff]  ;;  %v235_v24 = vld [vmem:[%s911_s4 + $0x20] sm:$0xff]  ;;  %s505_s18 = sshll.u32 %s729_s1, 4  ;;  %s506_s18 = int_to_ptr.vmem [resolvable:$true] %s505_s18 }
   0xe   :  { %v236_v25 = vld [vmem:[%s911_s4 + $0x28] sm:$0xff]  ;;  %v237_v26 = vld [vmem:[%s911_s4 + $0x30] sm:$0xff]  ;;  %v238_v27 = vld [vmem:[%s911_s4 + $0x38] sm:$0xff]  ;;  %s701_s19 = scalar_lea.vmem %s506_s18, 128  ;;  %p706_p1 = scmp.lt.s32.totalorder %s506_s18, %s506_s18 }
   0xf   :  { %82 = vperm.xlu1 %666, %v44_v18   ;;  %v418_v28 = vld [vmem:[%s913_s6] sm:$0xff]  ;;  %v224_v2 = vld [vmem:[%s910_s3 + $0x8] sm:$0xff]  ;;  %v225_v3 = vld [vmem:[%s910_s3 + $0x10] sm:$0xff]  ;;  %p702_p0 = scmp.ne.s32.totalorder %s506_s18, %s701_s19  ;;  %p707_p2 = scmp.lt.s32.totalorder %s701_s19, %s701_s19 }
  0x10   :  { %576 = vmatmul.mubr.msk.f32.gmra.mrb[4].mxu0 %vm85_vm0, %v34_v15  ;;  %77 = vperm.xlu0 %665, %v43_v17   ;;  %v223_v29 = vld [vmem:[%s910_s3] sm:$0xff]  ;;  %v226_v4 = vld [vmem:[%s910_s3 + $0x18] sm:$0xff]  ;;  %v228_v6 = vld [vmem:[%s910_s3 + $0x28] sm:$0xff] }
  0x11   :  { %578 = vmatprep.mubr.msk.f32.mxu0 %vm85_vm0, %v35_v16  ;;  %597 = vmatprep.mubr.msk.f32.mxu1 %vm279_vm1, %v223_v29  ;;  %v227_v5 = vld [vmem:[%s910_s3 + $0x20] sm:$0xff]  ;;  %v229_v7 = vld [vmem:[%s910_s3 + $0x30] sm:$0xff]  ;;  %v230_v8 = vld [vmem:[%s910_s3 + $0x38] sm:$0xff]  ;;  %p708_p3 = por %p707_p2, %p706_p1 }
  0x13   :  { %246 = vperm.xlu1 %666, %v232_v21   ;;  %p709_p4 = pnand %p708_p3, %p702_p0 }
  0x14   :  { %579 = vmatmul.mubr.msk.f32.gmra.mrb[6].mxu0 %vm85_vm0, %v36_v19  ;;  %241 = vperm.xlu0 %665, %v231_v20  }
  0x15   :  { %625 = vmatprep.mubr.msk.f32.mxu0 %vm727_vm2, %v728_v10 }
  0x17   :  { %256 = vperm.xlu1 %666, %v234_v23  }
  0x18   :  { %251 = vperm.xlu0 %665, %v233_v22  }
  0x1b   :  { %266 = vperm.xlu1 %666, %v236_v25  }
  0x1c   :  { %261 = vperm.xlu0 %665, %v235_v24  }
  0x1f   :  { %276 = vperm.xlu1 %666, %v238_v27  }
  0x20   :  { %271 = vperm.xlu0 %665, %v237_v26  }
  0x24   :  { %421 = vperm.xlu0 %665, %v418_v28  }
  0x81   :  { %v58_v31 = vpop.permute.xlu1 %57 }
  0x83   :  { %v48_v30 = vpop.permute.xlu0 %47 }
  0x85   :  { %v63_v33 = vpop.permute.xlu1 %62 }
  0x87   :  { %v53_v32 = vpop.permute.xlu0 %52 }
  0x8a   :  { %v73_v41 = vpop.permute.xlu1 %72 }
  0x8b   :  { %v68_v43 = vpop.permute.xlu0 %67 }
  0x8e   :  { %v83_v48 = vpop.permute.xlu1 %82 }
  0x8f   :  { %v78_v51 = vpop.permute.xlu0 %77 }
  0x92   :  { %v247_v11 = vpop.permute.xlu1 %246 }
  0x93   :  { %v242_v12 = vpop.permute.xlu0 %241 }
  0x96   :  { %v257_v13 = vpop.permute.xlu1 %256 }
  0x97   :  { %v252_v15 = vpop.permute.xlu0 %251 }
  0x9a   :  { %v267_v22 = vpop.permute.xlu1 %266 }
  0x9b   :  { %v262_v24 = vpop.permute.xlu0 %261 }
  0x9e   :  { %v277_v29 = vpop.permute.xlu1 %276 }
  0xdb   :  { %v571_v34 = vpop.f32.mrb[0].mxu0 }
  0xdc   :  { %v182_v35 = vadd.f32 %v571_v34, %v53_v32  ;;  %v176_v36 = vpop.f32.mrb[1].mxu0  ;;  %v272_v32 = vpop.permute.xlu0 %271 }
  0xdd   :  { %v177_v37 = vadd.f32 %v176_v36, %v48_v30 }
  0xde   :  { %667 = vtanh.f32 %v182_v35 }
  0xdf   :  { %669 = vtanh.f32 %v177_v37  ;;  %v574_v38 = vpop.f32.mrb[2].mxu0 }
  0xe0   :  { %v192_v39 = vadd.f32 %v574_v38, %v63_v33  ;;  %v186_v40 = vpop.f32.mrb[3].mxu0 }
  0xe1   :  { %v187_v42 = vadd.f32 %v186_v40, %v58_v31 }
  0xe2   :  { %671 = vtanh.f32 %v192_v39 }
  0xe3   :  { %673 = vtanh.f32 %v187_v42  ;;  %v577_v44 = vpop.f32.mrb[4].mxu0 }
  0xe4   :  { %v202_v45 = vadd.f32 %v577_v44, %v73_v41  ;;  %v196_v46 = vpop.f32.mrb[5].mxu0 }
  0xe5   :  { %v197_v47 = vadd.f32 %v196_v46, %v68_v43 }
  0xe6   :  { %675 = vtanh.f32 %v202_v45 }
  0xe7   :  { %677 = vtanh.f32 %v197_v47  ;;  %v580_v49 = vpop.f32.mrb[6].mxu0  ;;  %v417_v47 = vld [vmem:[%s912_s5] sm:$0xff] }
  0xe8   :  { %v668_v50 = vpop.eup %667  ;;  %v212_v52 = vadd.f32 %v580_v49, %v83_v48  ;;  %v206_v53 = vpop.f32.mrb[7].mxu0 }
  0xe9   :  { %v670_v54 = vpop.eup %669  ;;  %v207_v55 = vadd.f32 %v206_v53, %v78_v51  ;;  %v422_v48 = vpop.permute.xlu0 %421 }
  0xea   :  { %679 = vtanh.f32 %v212_v52  ;;  %v632_v56 = vpack.c.bf16 %v668_v50, %v670_v54 }
  0xeb   :  { %681 = vtanh.f32 %v207_v55 }
  0xec   :  { %v672_v57 = vpop.eup %671  ;;  %633 = vmatprep.subr.bf16.mxu1 %v632_v56 }
  0xed   :  { %v674_v58 = vpop.eup %673  ;;  %635 = vmatpush3.bf16.msra.mxu1 %v632_v56 }
  0xee   :  { %v636_v59 = vpack.c.bf16 %v672_v57, %v674_v58 }
  0xf0   :  { %v676_v60 = vpop.eup %675  ;;  %637 = vmatprep.subr.bf16.mxu1 %v636_v59 }
  0xf1   :  { %v678_v61 = vpop.eup %677  ;;  %639 = vmatpush3.bf16.msra.mxu1 %v636_v59 }
  0xf2   :  { %v640_v62 = vpack.c.bf16 %v676_v60, %v678_v61 }
  0xf4   :  { %v680_v63 = vpop.eup %679  ;;  %641 = vmatprep.subr.bf16.mxu1 %v640_v62 }
  0xf5   :  { %v682_v0 = vpop.eup %681  ;;  %643 = vmatpush3.bf16.msra.mxu1 %v640_v62 }
  0xf6   :  { %v644_v1 = vpack.c.bf16 %v680_v63, %v682_v0 }
  0xf8   :  { %645 = vmatprep.subr.bf16.mxu1 %v644_v1 }
  0xf9   :  { %647 = vmatpush3.bf16.msra.mxu1 %v644_v1 }
  0xfc   :  { %598 = vmatmul.mubr.msk.f32.vlgmr.msra.gmra.mrb[0].mxu1 %vm279_vm1, %v224_v2 }
  0xfd   :  { %600 = vmatprep.mubr.msk.f32.mxu1 %vm279_vm1, %v225_v3 }
 0x100   :  { %601 = vmatmul.mubr.msk.f32.gmra.mrb[2].mxu1 %vm279_vm1, %v226_v4 }
 0x101   :  { %603 = vmatprep.mubr.msk.f32.mxu1 %vm279_vm1, %v227_v5 }
 0x104   :  { %604 = vmatmul.mubr.msk.f32.gmra.mrb[4].mxu1 %vm279_vm1, %v228_v6 }
 0x105   :  { %606 = vmatprep.mubr.msk.f32.mxu1 %vm279_vm1, %v229_v7 }
 0x108   :  { %607 = vmatmul.mubr.msk.f32.gmra.mrb[6].mxu1 %vm279_vm1, %v230_v8 }
 0x1cf   :  { %v599_v14 = vpop.f32.mrb[0].mxu1 }
 0x1d0   :  { %v376_v16 = vadd.f32 %v599_v14, %v247_v11  ;;  %v370_v17 = vpop.f32.mrb[1].mxu1 }
 0x1d1   :  { %v371_v18 = vadd.f32 %v370_v17, %v242_v12 }
 0x1d2   :  { %683 = vtanh.f32 %v376_v16 }
 0x1d3   :  { %685 = vtanh.f32 %v371_v18  ;;  %v602_v19 = vpop.f32.mrb[2].mxu1 }
 0x1d4   :  { %v386_v20 = vadd.f32 %v602_v19, %v257_v13  ;;  %v380_v21 = vpop.f32.mrb[3].mxu1 }
 0x1d5   :  { %v381_v23 = vadd.f32 %v380_v21, %v252_v15 }
 0x1d6   :  { %687 = vtanh.f32 %v386_v20 }
 0x1d7   :  { %689 = vtanh.f32 %v381_v23  ;;  %v605_v25 = vpop.f32.mrb[4].mxu1 }
 0x1d8   :  { %v396_v26 = vadd.f32 %v605_v25, %v267_v22  ;;  %v390_v27 = vpop.f32.mrb[5].mxu1 }
 0x1d9   :  { %v391_v28 = vadd.f32 %v390_v27, %v262_v24 }
 0x1da   :  { %691 = vtanh.f32 %v396_v26 }
 0x1db   :  { %693 = vtanh.f32 %v391_v28  ;;  %v608_v30 = vpop.f32.mrb[6].mxu1 }
 0x1dc   :  { %v684_v31 = vpop.eup %683  ;;  %v406_v33 = vadd.f32 %v608_v30, %v277_v29  ;;  %v400_v34 = vpop.f32.mrb[7].mxu1 }
 0x1dd   :  { %v686_v35 = vpop.eup %685  ;;  %v401_v36 = vadd.f32 %v400_v34, %v272_v32 }
 0x1de   :  { %695 = vtanh.f32 %v406_v33  ;;  %v649_v37 = vpack.c.bf16 %v684_v31, %v686_v35 }
 0x1df   :  { %697 = vtanh.f32 %v401_v36 }
 0x1e0   :  { %v688_v38 = vpop.eup %687  ;;  %650 = vmatpush3.bf16.msra.mxu0 %v649_v37 }
 0x1e1   :  { %v690_v39 = vpop.eup %689  ;;  %651 = vmatprep.subr.bf16.mxu0 %v726_v9 }
 0x1e2   :  { %v652_v40 = vpack.c.bf16 %v688_v38, %v690_v39 }
 0x1e4   :  { %v692_v41 = vpop.eup %691  ;;  %653 = vmatpush3.bf16.msra.mxu0 %v652_v40 }
 0x1e5   :  { %v694_v42 = vpop.eup %693  ;;  %654 = vmatprep.subr.bf16.mxu0 %v726_v9 }
 0x1e6   :  { %v655_v43 = vpack.c.bf16 %v692_v41, %v694_v42 }
 0x1e8   :  { %v696_v44 = vpop.eup %695  ;;  %656 = vmatpush3.bf16.msra.mxu0 %v655_v43 }
 0x1e9   :  { %v698_v45 = vpop.eup %697  ;;  %657 = vmatprep.subr.bf16.mxu0 %v726_v9 }
 0x1ea   :  { %v658_v46 = vpack.c.bf16 %v696_v44, %v698_v45 }
 0x1ec   :  { %659 = vmatpush3.bf16.msra.mxu0 %v658_v46 }
 0x1ef   :  { %626 = vmatmul.mubr.msk.f32.vlgmr.msra.gmra.mrb[8].mxu0 %vm279_vm1, %v417_v47 }
 0x2c2   :  { %v493_v49 = vpop.f32.mrb[8].mxu0 }
 0x2c3   :  { %v494_v50 = vadd.f32 %v493_v49, %v422_v48  ;;  %v627_v51 = vpop.f32.mrb[9].mxu0 }
 0x2c5   :  { %699 = vtanh.f32 %v494_v50 }
 0x2cf   :  { %v700_v52 = vpop.eup %699 }
 0x2d0   :  { %498 = vst [vmem:[#allocation2] sm:$0xff] %v700_v52 }
 0x2d1   :  { %712 = shalt.err (!%p709_p4)
}
 0x2d2   :  { %s713_s21 = scalar_lea.hbm %s914_s7, 128 }
 0x2d3   :  { %p714_p5 = scmp.ne.s32.totalorder %s914_s7, %s713_s21  ;;  %p717_p6 = scmp.lt.u32.totalorder %s713_s21, %s914_s7 }
 0x2d5   :  { %p719_p7 = pnand %p717_p6, %p714_p5 }
 0x2d7   :  { %722 = shalt.err (!%p719_p7)
}
 0x2d8   :  { %508 = dma.vmem_to_hbm [thread:$0]  %s506_s18, 128, %s914_s7, [#allocation3]  }
 0x2d9   :  { %723 = dma.done.wait [#allocation3], 128  }
 0x2da   :  { %724 = vsyncadd [#allocation3], 4294967168 }
 0x2db   :  { %512 = vsyncpa [#allocation3], 1 }

</bundles_post_ra>
